<compile_context>
chip_gen: v5e
topology: v5e:2x2
jax: 0.10.0
libtpu: 0.0.40
codegen_flags: <defaults>
</compile_context>

<pallas_src>
import functools

import jax
import jax.numpy as jnp
from jax.experimental import pallas as pl
from jax.experimental.pallas import tpu as pltpu

LANE = 128


def _ghmc_stats_kernel(x_ref, t_ref, stats_ref, *, bins, srows, exact_binning):
    """Accumulate cumulative-threshold sufficient statistics for GHM-C.

    stats_ref block (1, srows, LANE) f32 — resident across the trailing
    "arbitrary" grid axis; one independent copy per "parallel" core index:
      rows [0 .. bins]        : P[i] = #{elements : g >= i/bins}        (per lane)
      rows [bins+1 .. 2*bins] : Q[i] = sum{loss : g*bins >= i}          (per lane)
    Padding elements are NOT masked here; the wrapper subtracts their exactly
    known contribution (x=0, t=0 -> g=0.5, loss=log 2).
    """
    @pl.when(pl.program_id(1) == 0)
    def _init():
        stats_ref[...] = jnp.zeros_like(stats_ref)

    x = x_ref[...].astype(jnp.float32)
    t = t_ref[...].astype(jnp.float32)

    # One exp(-|x|) feeds both the stable BCE-with-logits and the sigmoid.
    e = jnp.exp(-jnp.abs(x))
    loss = jnp.maximum(x, 0.0) - x * t + jnp.log1p(e)    # BCEWithLogits, reduction='none'
    r = 1.0 / (1.0 + e)
    pred = jnp.where(x >= 0.0, r, e * r)                 # == sigmoid(x)
    g = jnp.abs(pred - t)
    gb = g * bins

    tm = x.shape[0]
    lanes = x.shape[1]
    # P[0]: every element of the tile counts (g >= 0 always) -> constant tm per lane.
    p_rows = [jnp.full((1, lanes), float(tm), jnp.float32)]
    # Q[0]: g*bins >= 0 always -> plain loss sum.
    q_rows = [jnp.sum(loss, axis=0, keepdims=True)]

    for i in range(1, bins + 1):
        m_cnt = g >= (i / bins)                          # torch histogram edge test
        p_rows.append(jnp.sum(jnp.where(m_cnt, 1.0, 0.0), axis=0, keepdims=True))
        if i < bins:
            # torch bins the loss by clamp(floor(g*bins)); sharing the compare with
            # the count path (exact_binning=False) only differs when g*bins lands
            # exactly on an integer (measure zero).
            m_loss = (gb >= float(i)) if exact_binning else m_cnt
            q_rows.append(jnp.sum(jnp.where(m_loss, loss, 0.0), axis=0, keepdims=True))

    rows = p_rows + q_rows                               # 2*bins + 1 rows
    pad = srows - len(rows)
    if pad:
        rows.append(jnp.zeros((pad, lanes), jnp.float32))
    stacked = jnp.concatenate(rows, axis=0)              # (srows, LANE)
    stats_ref[...] += stacked[None]                      # single full-tile RMW / step


def ghmc_loss(x, target, *, bins=10, alpha=0.75, block_rows=2048,
              num_cores=2, exact_binning=True):
    """Pallas implementation of GHMCLoss.forward(x, target) -> scalar mean loss."""
    assert x.shape == target.shape
    assert num_cores >= 1
    n = x.size

    block_rows = max(8, (block_rows // 8) * 8)
    rows = -(-n // LANE)
    tm = min(block_rows, ((rows + 7) // 8) * 8)          # tile rows (multiple of 8)
    stride = num_cores * tm
    rows_pad = ((rows + stride - 1) // stride) * stride
    nb = rows_pad // stride                              # row-blocks per core
    n_pad = rows_pad * LANE

    xf = jnp.ravel(x)                                    # keep native dtype (cast in-kernel)
    tf = jnp.ravel(target)
    if n_pad != n:
        xf = jnp.pad(xf, (0, n_pad - n))
        tf = jnp.pad(tf, (0, n_pad - n))
    x2 = xf.reshape(rows_pad, LANE)
    t2 = tf.reshape(rows_pad, LANE)

    srows = ((2 * bins + 1 + 7) // 8) * 8                # stats rows, padded to 8

    kernel = functools.partial(_ghmc_stats_kernel, bins=bins, srows=srows,
                               exact_binning=exact_binning)
    cost = pl.CostEstimate(
        flops=(8 * bins + 24) * n_pad,
        transcendentals=2 * n_pad,
        bytes_accessed=n_pad * (x.dtype.itemsize + target.dtype.itemsize)
        + num_cores * srows * LANE * 4,
    )

    stats = pl.pallas_call(
        kernel,
        out_shape=jax.ShapeDtypeStruct((num_cores, srows, LANE), jnp.float32),
        grid=(num_cores, nb),
        in_specs=[
            pl.BlockSpec((tm, LANE), lambda c, i: (c * nb + i, 0)),
            pl.BlockSpec((tm, LANE), lambda c, i: (c * nb + i, 0)),
        ],
        out_specs=pl.BlockSpec((1, srows, LANE), lambda c, i: (c, 0, 0)),
        compiler_params=pltpu.CompilerParams(
            dimension_semantics=("parallel", "arbitrary")),
        cost_estimate=cost,
    )(x2, t2)

    # ---- tiny finalize in JAX: combine cores/lanes, undo padding, bin weights ----
    s = jnp.sum(stats, axis=(0, 2))                      # (srows,)
    P = s[:bins + 1]                                     # cumulative counts
    Q = s[bins + 1:2 * bins + 1]                         # cumulative loss sums

    n_padding = n_pad - n
    if n_padding:
        # Padded elements are x=0, t=0 -> pred=0.5, g=0.5 (exact), loss=log1p(1).
        # Subtract their exactly known contribution instead of masking in-kernel.
        g_pad = jnp.float32(0.5)
        loss_pad = jnp.log1p(jnp.float32(1.0))
        cnt_edges = jnp.asarray([i / bins for i in range(bins + 1)], jnp.float32)
        P = P - jnp.where(g_pad >= cnt_edges, jnp.float32(n_padding), jnp.float32(0.0))
        if exact_binning:
            q_hit = (g_pad * bins) >= jnp.arange(bins, dtype=jnp.float32)
        else:
            q_hit = g_pad >= jnp.asarray([i / bins for i in range(bins)], jnp.float32)
        Q = Q - jnp.where(q_hit, jnp.float32(n_padding) * loss_pad, jnp.float32(0.0))

    counts = P[:bins] - P[1:]                            # torch edge-test histogram
    loss_sums = Q - jnp.concatenate([Q[1:], jnp.zeros((1,), jnp.float32)])
    w = jnp.maximum(counts, 1.0) ** (-alpha)             # tot.clamp(min=1).pow(-alpha)
    return jnp.sum(w * loss_sums) / n

    # TODO(synk): the torch module also stashes the bin weights in self.weights
    # (a stateful side effect); not reproduced here since it does not affect the
    # forward output.


def _ghmc_loss_ref(x, target, *, bins=10, alpha=0.75):
    """Pure-JAX reference mirroring the PyTorch module, for a correctness check."""
    x = x.astype(jnp.float32)
    t = target.astype(jnp.float32)
    pred = jax.nn.sigmoid(x)
    loss = jnp.maximum(x, 0.0) - x * t + jnp.log1p(jnp.exp(-jnp.abs(x)))
    g = jnp.abs(pred - t)
    edges = jnp.arange(0, bins + 1, dtype=jnp.float32) / bins
    tot = jnp.stack(
        [jnp.sum(((g >= edges[i]) & (g < edges[i + 1])).astype(jnp.float32))
         for i in range(bins)]
    )
    w = jnp.maximum(tot, 1.0) ** (-alpha)
    bin_idx = jnp.clip(jnp.floor(g * bins), 0, bins - 1).astype(jnp.int32)
    sample_w = w[bin_idx]
    return jnp.mean(loss * sample_w)


if __name__ == "__main__":
    key = jax.random.PRNGKey(0)
    kx, kt = jax.random.split(key)

    # Small NCHW-style logits + binary targets, consistent with the module's forward.
    x = jax.random.normal(kx, (2, 4, 16, 16), dtype=jnp.float32)
    target = jax.random.bernoulli(kt, p=0.5, shape=(2, 4, 16, 16)).astype(jnp.float32)

    out = jax.block_until_ready(ghmc_loss(x, target, bins=10, alpha=0.75))
    ref = jax.block_until_ready(_ghmc_loss_ref(x, target, bins=10, alpha=0.75))
    assert jnp.allclose(out, ref, rtol=1e-5, atol=1e-6), (out, ref)

    print("KERNEL_OK")
</pallas_src>

<mosaic_0001>
module attributes {stable_mosaic.version = 11 : i64} {
  func.func @_ghmc_stats_kernel(%arg0: i32, %arg1: i32, %arg2: memref<16x128xf32, #tpu.memory_space<vmem>>, %arg3: memref<16x128xf32, #tpu.memory_space<vmem>>, %arg4: memref<1x24x128xf32, #tpu.memory_space<vmem>>) attributes {dimension_semantics = [#tpu.dimension_semantics<parallel>, #tpu.dimension_semantics<arbitrary>], iteration_bounds = array<i64: 2, 1>, scalar_prefetch = 0 : i64, scratch_operands = 0 : i64, tpu.core_type = #tpu.core_type<tc>, window_params = [{transform_indices = @transform_0, window_bounds = array<i64: 16, 128>}, {transform_indices = @transform_1, window_bounds = array<i64: 16, 128>}, {transform_indices = @transform_2, window_bounds = array<i64: 1, 24, 128>}]} {
    %c0_i32 = arith.constant 0 : i32
    %0 = arith.cmpi eq, %arg1, %c0_i32 : i32
    %1 = arith.extui %0 : i1 to i32
    %c0_i32_0 = arith.constant 0 : i32
    %2 = arith.cmpi ne, %1, %c0_i32_0 : i32
    scf.if %2 {
      %cst_85 = arith.constant 0.000000e+00 : f32
      %162 = vector.broadcast %cst_85 : f32 to vector<1x24x128xf32>
      %c0_86 = arith.constant 0 : index
      %c0_87 = arith.constant 0 : index
      %c0_88 = arith.constant 0 : index
      %163 = vector.load %arg4[%c0_86, %c0_87, %c0_88] : memref<1x24x128xf32, #tpu.memory_space<vmem>>, vector<1x24x128xf32>
      tpu.vector_store %arg4[%c0_86, %c0_87, %c0_88], %162 {strides = array<i32>} : memref<1x24x128xf32, #tpu.memory_space<vmem>>, vector<1x24x128xf32>,
    } else {
    }
    %c0 = arith.constant 0 : index
    %c0_1 = arith.constant 0 : index
    %3 = vector.load %arg2[%c0, %c0_1] : memref<16x128xf32, #tpu.memory_space<vmem>>, vector<16x128xf32>
    %c0_2 = arith.constant 0 : index
    %c0_3 = arith.constant 0 : index
    %4 = vector.load %arg3[%c0_2, %c0_3] : memref<16x128xf32, #tpu.memory_space<vmem>>, vector<16x128xf32>
    %5 = math.absf %3 : vector<16x128xf32>
    %cst = arith.constant 0.000000e+00 : f32
    %6 = vector.broadcast %cst : f32 to vector<16x128xf32>
    %7 = arith.subf %6, %5 : vector<16x128xf32>
    %8 = math.exp %7 : vector<16x128xf32>
    %cst_4 = arith.constant 0.000000e+00 : f32
    %9 = vector.broadcast %cst_4 : f32 to vector<16x128xf32>
    %10 = arith.maximumf %3, %9 : vector<16x128xf32>
    %11 = arith.mulf %3, %4 : vector<16x128xf32>
    %12 = arith.subf %10, %11 : vector<16x128xf32>
    %13 = math.log1p %8 : vector<16x128xf32>
    %14 = arith.addf %12, %13 : vector<16x128xf32>
    %cst_5 = arith.constant 1.000000e+00 : f32
    %15 = vector.broadcast %cst_5 : f32 to vector<16x128xf32>
    %16 = arith.addf %15, %8 : vector<16x128xf32>
    %cst_6 = arith.constant 1.000000e+00 : f32
    %17 = vector.broadcast %cst_6 : f32 to vector<16x128xf32>
    %18 = arith.divf %17, %16 : vector<16x128xf32>
    %cst_7 = arith.constant 0.000000e+00 : f32
    %19 = vector.broadcast %cst_7 : f32 to vector<16x128xf32>
    %20 = arith.cmpf oge, %3, %19 : vector<16x128xf32>
    %21 = arith.mulf %8, %18 : vector<16x128xf32>
    %22 = arith.select %20, %18, %21 : vector<16x128xi1>, vector<16x128xf32>
    %23 = arith.subf %22, %4 : vector<16x128xf32>
    %24 = math.absf %23 : vector<16x128xf32>
    %cst_8 = arith.constant 1.000000e+01 : f32
    %25 = vector.broadcast %cst_8 : f32 to vector<16x128xf32>
    %26 = arith.mulf %24, %25 : vector<16x128xf32>
    %cst_9 = arith.constant 1.600000e+01 : f32
    %27 = vector.broadcast %cst_9 : f32 to vector<1x128xf32>
    %cst_10 = arith.constant dense<0.000000e+00> : vector<128xf32>
    %28 = vector.multi_reduction <add>, %14, %cst_10 [0] : vector<16x128xf32> to vector<128xf32>
    %29 = vector.shape_cast %28 : vector<128xf32> to vector<1x128xf32>
    %cst_11 = arith.constant 1.000000e-01 : f32
    %30 = vector.broadcast %cst_11 : f32 to vector<16x128xf32>
    %31 = arith.cmpf oge, %24, %30 : vector<16x128xf32>
    %cst_12 = arith.constant 1.000000e+00 : f32
    %cst_13 = arith.constant 0.000000e+00 : f32
    %32 = vector.broadcast %cst_12 : f32 to vector<16x128xf32>
    %33 = vector.broadcast %cst_13 : f32 to vector<16x128xf32>
    %34 = arith.select %31, %32, %33 : vector<16x128xi1>, vector<16x128xf32>
    %cst_14 = arith.constant dense<0.000000e+00> : vector<128xf32>
    %35 = vector.multi_reduction <add>, %34, %cst_14 [0] : vector<16x128xf32> to vector<128xf32>
    %36 = vector.shape_cast %35 : vector<128xf32> to vector<1x128xf32>
    %cst_15 = arith.constant 1.000000e+00 : f32
    %37 = vector.broadcast %cst_15 : f32 to vector<16x128xf32>
    %38 = arith.cmpf oge, %26, %37 : vector<16x128xf32>
    %cst_16 = arith.constant 0.000000e+00 : f32
    %39 = vector.broadcast %cst_16 : f32 to vector<16x128xf32>
    %40 = arith.select %38, %14, %39 : vector<16x128xi1>, vector<16x128xf32>
    %cst_17 = arith.constant dense<0.000000e+00> : vector<128xf32>
    %41 = vector.multi_reduction <add>, %40, %cst_17 [0] : vector<16x128xf32> to vector<128xf32>
    %42 = vector.shape_cast %41 : vector<128xf32> to vector<1x128xf32>
    %cst_18 = arith.constant 2.000000e-01 : f32
    %43 = vector.broadcast %cst_18 : f32 to vector<16x128xf32>
    %44 = arith.cmpf oge, %24, %43 : vector<16x128xf32>
    %cst_19 = arith.constant 1.000000e+00 : f32
    %cst_20 = arith.constant 0.000000e+00 : f32
    %45 = vector.broadcast %cst_19 : f32 to vector<16x128xf32>
    %46 = vector.broadcast %cst_20 : f32 to vector<16x128xf32>
    %47 = arith.select %44, %45, %46 : vector<16x128xi1>, vector<16x128xf32>
    %cst_21 = arith.constant dense<0.000000e+00> : vector<128xf32>
    %48 = vector.multi_reduction <add>, %47, %cst_21 [0] : vector<16x128xf32> to vector<128xf32>
    %49 = vector.shape_cast %48 : vector<128xf32> to vector<1x128xf32>
    %cst_22 = arith.constant 2.000000e+00 : f32
    %50 = vector.broadcast %cst_22 : f32 to vector<16x128xf32>
    %51 = arith.cmpf oge, %26, %50 : vector<16x128xf32>
    %cst_23 = arith.constant 0.000000e+00 : f32
    %52 = vector.broadcast %cst_23 : f32 to vector<16x128xf32>
    %53 = arith.select %51, %14, %52 : vector<16x128xi1>, vector<16x128xf32>
    %cst_24 = arith.constant dense<0.000000e+00> : vector<128xf32>
    %54 = vector.multi_reduction <add>, %53, %cst_24 [0] : vector<16x128xf32> to vector<128xf32>
    %55 = vector.shape_cast %54 : vector<128xf32> to vector<1x128xf32>
    %cst_25 = arith.constant 3.000000e-01 : f32
    %56 = vector.broadcast %cst_25 : f32 to vector<16x128xf32>
    %57 = arith.cmpf oge, %24, %56 : vector<16x128xf32>
    %cst_26 = arith.constant 1.000000e+00 : f32
    %cst_27 = arith.constant 0.000000e+00 : f32
    %58 = vector.broadcast %cst_26 : f32 to vector<16x128xf32>
    %59 = vector.broadcast %cst_27 : f32 to vector<16x128xf32>
    %60 = arith.select %57, %58, %59 : vector<16x128xi1>, vector<16x128xf32>
    %cst_28 = arith.constant dense<0.000000e+00> : vector<128xf32>
    %61 = vector.multi_reduction <add>, %60, %cst_28 [0] : vector<16x128xf32> to vector<128xf32>
    %62 = vector.shape_cast %61 : vector<128xf32> to vector<1x128xf32>
    %cst_29 = arith.constant 3.000000e+00 : f32
    %63 = vector.broadcast %cst_29 : f32 to vector<16x128xf32>
    %64 = arith.cmpf oge, %26, %63 : vector<16x128xf32>
    %cst_30 = arith.constant 0.000000e+00 : f32
    %65 = vector.broadcast %cst_30 : f32 to vector<16x128xf32>
    %66 = arith.select %64, %14, %65 : vector<16x128xi1>, vector<16x128xf32>
    %cst_31 = arith.constant dense<0.000000e+00> : vector<128xf32>
    %67 = vector.multi_reduction <add>, %66, %cst_31 [0] : vector<16x128xf32> to vector<128xf32>
    %68 = vector.shape_cast %67 : vector<128xf32> to vector<1x128xf32>
    %cst_32 = arith.constant 4.000000e-01 : f32
    %69 = vector.broadcast %cst_32 : f32 to vector<16x128xf32>
    %70 = arith.cmpf oge, %24, %69 : vector<16x128xf32>
    %cst_33 = arith.constant 1.000000e+00 : f32
    %cst_34 = arith.constant 0.000000e+00 : f32
    %71 = vector.broadcast %cst_33 : f32 to vector<16x128xf32>
    %72 = vector.broadcast %cst_34 : f32 to vector<16x128xf32>
    %73 = arith.select %70, %71, %72 : vector<16x128xi1>, vector<16x128xf32>
    %cst_35 = arith.constant dense<0.000000e+00> : vector<128xf32>
    %74 = vector.multi_reduction <add>, %73, %cst_35 [0] : vector<16x128xf32> to vector<128xf32>
    %75 = vector.shape_cast %74 : vector<128xf32> to vector<1x128xf32>
    %cst_36 = arith.constant 4.000000e+00 : f32
    %76 = vector.broadcast %cst_36 : f32 to vector<16x128xf32>
    %77 = arith.cmpf oge, %26, %76 : vector<16x128xf32>
    %cst_37 = arith.constant 0.000000e+00 : f32
    %78 = vector.broadcast %cst_37 : f32 to vector<16x128xf32>
    %79 = arith.select %77, %14, %78 : vector<16x128xi1>, vector<16x128xf32>
    %cst_38 = arith.constant dense<0.000000e+00> : vector<128xf32>
    %80 = vector.multi_reduction <add>, %79, %cst_38 [0] : vector<16x128xf32> to vector<128xf32>
    %81 = vector.shape_cast %80 : vector<128xf32> to vector<1x128xf32>
    %cst_39 = arith.constant 5.000000e-01 : f32
    %82 = vector.broadcast %cst_39 : f32 to vector<16x128xf32>
    %83 = arith.cmpf oge, %24, %82 : vector<16x128xf32>
    %cst_40 = arith.constant 1.000000e+00 : f32
    %cst_41 = arith.constant 0.000000e+00 : f32
    %84 = vector.broadcast %cst_40 : f32 to vector<16x128xf32>
    %85 = vector.broadcast %cst_41 : f32 to vector<16x128xf32>
    %86 = arith.select %83, %84, %85 : vector<16x128xi1>, vector<16x128xf32>
    %cst_42 = arith.constant dense<0.000000e+00> : vector<128xf32>
    %87 = vector.multi_reduction <add>, %86, %cst_42 [0] : vector<16x128xf32> to vector<128xf32>
    %88 = vector.shape_cast %87 : vector<128xf32> to vector<1x128xf32>
    %cst_43 = arith.constant 5.000000e+00 : f32
    %89 = vector.broadcast %cst_43 : f32 to vector<16x128xf32>
    %90 = arith.cmpf oge, %26, %89 : vector<16x128xf32>
    %cst_44 = arith.constant 0.000000e+00 : f32
    %91 = vector.broadcast %cst_44 : f32 to vector<16x128xf32>
    %92 = arith.select %90, %14, %91 : vector<16x128xi1>, vector<16x128xf32>
    %cst_45 = arith.constant dense<0.000000e+00> : vector<128xf32>
    %93 = vector.multi_reduction <add>, %92, %cst_45 [0] : vector<16x128xf32> to vector<128xf32>
    %94 = vector.shape_cast %93 : vector<128xf32> to vector<1x128xf32>
    %cst_46 = arith.constant 6.000000e-01 : f32
    %95 = vector.broadcast %cst_46 : f32 to vector<16x128xf32>
    %96 = arith.cmpf oge, %24, %95 : vector<16x128xf32>
    %cst_47 = arith.constant 1.000000e+00 : f32
    %cst_48 = arith.constant 0.000000e+00 : f32
    %97 = vector.broadcast %cst_47 : f32 to vector<16x128xf32>
    %98 = vector.broadcast %cst_48 : f32 to vector<16x128xf32>
    %99 = arith.select %96, %97, %98 : vector<16x128xi1>, vector<16x128xf32>
    %cst_49 = arith.constant dense<0.000000e+00> : vector<128xf32>
    %100 = vector.multi_reduction <add>, %99, %cst_49 [0] : vector<16x128xf32> to vector<128xf32>
    %101 = vector.shape_cast %100 : vector<128xf32> to vector<1x128xf32>
    %cst_50 = arith.constant 6.000000e+00 : f32
    %102 = vector.broadcast %cst_50 : f32 to vector<16x128xf32>
    %103 = arith.cmpf oge, %26, %102 : vector<16x128xf32>
    %cst_51 = arith.constant 0.000000e+00 : f32
    %104 = vector.broadcast %cst_51 : f32 to vector<16x128xf32>
    %105 = arith.select %103, %14, %104 : vector<16x128xi1>, vector<16x128xf32>
    %cst_52 = arith.constant dense<0.000000e+00> : vector<128xf32>
    %106 = vector.multi_reduction <add>, %105, %cst_52 [0] : vector<16x128xf32> to vector<128xf32>
    %107 = vector.shape_cast %106 : vector<128xf32> to vector<1x128xf32>
    %cst_53 = arith.constant 0.699999988 : f32
    %108 = vector.broadcast %cst_53 : f32 to vector<16x128xf32>
    %109 = arith.cmpf oge, %24, %108 : vector<16x128xf32>
    %cst_54 = arith.constant 1.000000e+00 : f32
    %cst_55 = arith.constant 0.000000e+00 : f32
    %110 = vector.broadcast %cst_54 : f32 to vector<16x128xf32>
    %111 = vector.broadcast %cst_55 : f32 to vector<16x128xf32>
    %112 = arith.select %109, %110, %111 : vector<16x128xi1>, vector<16x128xf32>
    %cst_56 = arith.constant dense<0.000000e+00> : vector<128xf32>
    %113 = vector.multi_reduction <add>, %112, %cst_56 [0] : vector<16x128xf32> to vector<128xf32>
    %114 = vector.shape_cast %113 : vector<128xf32> to vector<1x128xf32>
    %cst_57 = arith.constant 7.000000e+00 : f32
    %115 = vector.broadcast %cst_57 : f32 to vector<16x128xf32>
    %116 = arith.cmpf oge, %26, %115 : vector<16x128xf32>
    %cst_58 = arith.constant 0.000000e+00 : f32
    %117 = vector.broadcast %cst_58 : f32 to vector<16x128xf32>
    %118 = arith.select %116, %14, %117 : vector<16x128xi1>, vector<16x128xf32>
    %cst_59 = arith.constant dense<0.000000e+00> : vector<128xf32>
    %119 = vector.multi_reduction <add>, %118, %cst_59 [0] : vector<16x128xf32> to vector<128xf32>
    %120 = vector.shape_cast %119 : vector<128xf32> to vector<1x128xf32>
    %cst_60 = arith.constant 8.000000e-01 : f32
    %121 = vector.broadcast %cst_60 : f32 to vector<16x128xf32>
    %122 = arith.cmpf oge, %24, %121 : vector<16x128xf32>
    %cst_61 = arith.constant 1.000000e+00 : f32
    %cst_62 = arith.constant 0.000000e+00 : f32
    %123 = vector.broadcast %cst_61 : f32 to vector<16x128xf32>
    %124 = vector.broadcast %cst_62 : f32 to vector<16x128xf32>
    %125 = arith.select %122, %123, %124 : vector<16x128xi1>, vector<16x128xf32>
    %cst_63 = arith.constant dense<0.000000e+00> : vector<128xf32>
    %126 = vector.multi_reduction <add>, %125, %cst_63 [0] : vector<16x128xf32> to vector<128xf32>
    %127 = vector.shape_cast %126 : vector<128xf32> to vector<1x128xf32>
    %cst_64 = arith.constant 8.000000e+00 : f32
    %128 = vector.broadcast %cst_64 : f32 to vector<16x128xf32>
    %129 = arith.cmpf oge, %26, %128 : vector<16x128xf32>
    %cst_65 = arith.constant 0.000000e+00 : f32
    %130 = vector.broadcast %cst_65 : f32 to vector<16x128xf32>
    %131 = arith.select %129, %14, %130 : vector<16x128xi1>, vector<16x128xf32>
    %cst_66 = arith.constant dense<0.000000e+00> : vector<128xf32>
    %132 = vector.multi_reduction <add>, %131, %cst_66 [0] : vector<16x128xf32> to vector<128xf32>
    %133 = vector.shape_cast %132 : vector<128xf32> to vector<1x128xf32>
    %cst_67 = arith.constant 0.899999976 : f32
    %134 = vector.broadcast %cst_67 : f32 to vector<16x128xf32>
    %135 = arith.cmpf oge, %24, %134 : vector<16x128xf32>
    %cst_68 = arith.constant 1.000000e+00 : f32
    %cst_69 = arith.constant 0.000000e+00 : f32
    %136 = vector.broadcast %cst_68 : f32 to vector<16x128xf32>
    %137 = vector.broadcast %cst_69 : f32 to vector<16x128xf32>
    %138 = arith.select %135, %136, %137 : vector<16x128xi1>, vector<16x128xf32>
    %cst_70 = arith.constant dense<0.000000e+00> : vector<128xf32>
    %139 = vector.multi_reduction <add>, %138, %cst_70 [0] : vector<16x128xf32> to vector<128xf32>
    %140 = vector.shape_cast %139 : vector<128xf32> to vector<1x128xf32>
    %cst_71 = arith.constant 9.000000e+00 : f32
    %141 = vector.broadcast %cst_71 : f32 to vector<16x128xf32>
    %142 = arith.cmpf oge, %26, %141 : vector<16x128xf32>
    %cst_72 = arith.constant 0.000000e+00 : f32
    %143 = vector.broadcast %cst_72 : f32 to vector<16x128xf32>
    %144 = arith.select %142, %14, %143 : vector<16x128xi1>, vector<16x128xf32>
    %cst_73 = arith.constant dense<0.000000e+00> : vector<128xf32>
    %145 = vector.multi_reduction <add>, %144, %cst_73 [0] : vector<16x128xf32> to vector<128xf32>
    %146 = vector.shape_cast %145 : vector<128xf32> to vector<1x128xf32>
    %cst_74 = arith.constant 1.000000e+00 : f32
    %147 = vector.broadcast %cst_74 : f32 to vector<16x128xf32>
    %148 = arith.cmpf oge, %24, %147 : vector<16x128xf32>
    %cst_75 = arith.constant 1.000000e+00 : f32
    %cst_76 = arith.constant 0.000000e+00 : f32
    %149 = vector.broadcast %cst_75 : f32 to vector<16x128xf32>
    %150 = vector.broadcast %cst_76 : f32 to vector<16x128xf32>
    %151 = arith.select %148, %149, %150 : vector<16x128xi1>, vector<16x128xf32>
    %cst_77 = arith.constant dense<0.000000e+00> : vector<128xf32>
    %152 = vector.multi_reduction <add>, %151, %cst_77 [0] : vector<16x128xf32> to vector<128xf32>
    %153 = vector.shape_cast %152 : vector<128xf32> to vector<1x128xf32>
    %cst_78 = arith.constant 0.000000e+00 : f32
    %154 = vector.broadcast %cst_78 : f32 to vector<3x128xf32>
    %155 = tpu.concatenate %27, %36, %49, %62, %75, %88, %101, %114, %127, %140, %153, %29, %42, %55, %68, %81 in 0 : vector<1x128xf32>, vector<1x128xf32>, vector<1x128xf32>, vector<1x128xf32>, vector<1x128xf32>, vector<1x128xf32>, vector<1x128xf32>, vector<1x128xf32>, vector<1x128xf32>, vector<1x128xf32>, vector<1x128xf32>, vector<1x128xf32>, vector<1x128xf32>, vector<1x128xf32>, vector<1x128xf32>, vector<1x128xf32> -> vector<16x128xf32>
    %156 = tpu.concatenate %94, %107, %120, %133, %146, %154 in 0 : vector<1x128xf32>, vector<1x128xf32>, vector<1x128xf32>, vector<1x128xf32>, vector<1x128xf32>, vector<3x128xf32> -> vector<8x128xf32>
    %157 = tpu.concatenate %155, %156 in 0 : vector<16x128xf32>, vector<8x128xf32> -> vector<24x128xf32>
    %c0_79 = arith.constant 0 : index
    %c0_80 = arith.constant 0 : index
    %c0_81 = arith.constant 0 : index
    %158 = vector.load %arg4[%c0_79, %c0_80, %c0_81] : memref<1x24x128xf32, #tpu.memory_space<vmem>>, vector<1x24x128xf32>
    %159 = vector.shape_cast %157 : vector<24x128xf32> to vector<1x24x128xf32>
    %160 = arith.addf %158, %159 : vector<1x24x128xf32>
    %c0_82 = arith.constant 0 : index
    %c0_83 = arith.constant 0 : index
    %c0_84 = arith.constant 0 : index
    %161 = vector.load %arg4[%c0_82, %c0_83, %c0_84] : memref<1x24x128xf32, #tpu.memory_space<vmem>>, vector<1x24x128xf32>
    tpu.vector_store %arg4[%c0_82, %c0_83, %c0_84], %160 {strides = array<i32>} : memref<1x24x128xf32, #tpu.memory_space<vmem>>, vector<1x24x128xf32>,
    return
  }
  func.func @transform_0(%arg0: i32, %arg1: i32) -> (i32, i32) {
    %c1_i32 = arith.constant 1 : i32
    %0 = arith.muli %arg0, %c1_i32 : i32
    %1 = arith.addi %0, %arg1 : i32
    %c0_i32 = arith.constant 0 : i32
    %c0_i32_0 = arith.constant 0 : i32
    return %1, %c0_i32 : i32, i32
  }
  func.func @transform_1(%arg0: i32, %arg1: i32) -> (i32, i32) {
    %c1_i32 = arith.constant 1 : i32
    %0 = arith.muli %arg0, %c1_i32 : i32
    %1 = arith.addi %0, %arg1 : i32
    %c0_i32 = arith.constant 0 : i32
    %c0_i32_0 = arith.constant 0 : i32
    return %1, %c0_i32 : i32, i32
  }
  func.func @transform_2(%arg0: i32, %arg1: i32) -> (i32, i32, i32) {
    %c0_i32 = arith.constant 0 : i32
    %c0_i32_0 = arith.constant 0 : i32
    %c0_i32_1 = arith.constant 0 : i32
    return %arg0, %c0_i32, %c0_i32_0 : i32, i32, i32
  }
}

</mosaic_0001>

<bundles_post_ra>
// kernel: tpu_custom_call.1
= control target key start
LH: loop header
LB: loop body
LE: loop exit
PB: predicated region body
PF: predicated region fallthrough
CT: control target
= control target key end

     0   :  { %7 = vsyncpa [#allocation3], 0  ;;  %s1279_s0 = inlined_call_operand.hbm [shape: f32[32,128], index: 0, kind: input, shape index: {}]   ;;  %s1280_s1 = inlined_call_operand.hbm [shape: f32[32,128], index: 1, kind: input, shape index: {}]   ;;  %s1281_s2 = inlined_call_operand.hbm [shape: f32[2,24,128], index: 2, kind: output, shape index: {}]  }
   0x1   :  { %9 = vsyncpa [#allocation3 + $0x1], 0 }
   0x2   :  { %10 = vsyncpa [#allocation6], 0 }
   0x3   :  { %12 = vsyncpa [#allocation6 + $0x1], 0 }
   0x4   :  { %13 = vsyncpa [#allocation4], 0 }
   0x5   :  { %15 = vsyncpa [#allocation4 + $0x1], 0  ;;  %s962_s9 = smov 0   ;;  %s964_s10 = smov 0  }
   0x6   :  { %s966_s11 = smov 0   ;;  %s968_s12 = smov 0  }
   0x7   :  { %s970_s13 = smov 0   ;;  %s972_s14 = smov 0  }
   0x8 LB: > { %s690_s15 = sadd.s32 4294967295, %s940_s14   ;;  %s691_s16 = sadd.s32 4294967294, %s940_s14   ;;  %s940_s14 = sphi %s972_s14, %s21_s14   ;;  %s936_s13 = sphi %s970_s13, %s1295_s13   ;;  %s932_s12 = sphi %s968_s12, %s1294_s12   ;;  %s928_s11 = sphi %s966_s11, %s1293_s11   ;;  %s924_s10 = sphi %s964_s10, %s1292_s10   ;;  %s920_s9 = sphi %s962_s9, %s1291_s9  }
   0x9   : > { %s33_s17 = sadd.s32 1, %s936_s13  ;;  %s42_s18 = sadd.s32 1, %s928_s11 }
   0xa   : > { %p35_p0 = scmp.ge.s32.totalorder %s33_s17, 2  ;;  %p49_p1 = scmp.ne.s32.totalorder %s928_s11, %s924_s10 }
   0xb   : > { %p50_p2 = scmp.eq.s32.totalorder %s940_s14, 0  ;;  %p55_p3 = scmp.ne.s32.totalorder %s924_s10, %s920_s9 }
   0xc   : > { %s1297_s17 = smov (%p35_p0, %s33_s17), 0  ;;  %p56_p5 = scmp.eq.s32.totalorder %s690_s15, 0 }
   0xd   : > { %p1003_p4 = por %p50_p2, %p49_p1  ;;  %s39_s20 = ssub.s32 %s936_s13, %s1297_s17 }
   0xe   : > { %p107_p6 = scmp.eq.s32.totalorder %s690_s15, 1  ;;  %p40_p7 = scmp.eq.s32.totalorder %s39_s20, 0 }
   0xf   : > { %p1009_p8 = por %p56_p5, %p55_p3  ;;  %p113_p10 = scmp.eq.s32.totalorder %s691_s16, 1 }
  0x10   : > { %p1013_p9 = por %p107_p6, %p49_p1  ;;  %p693_p12 = scmp.ge.s32.totalorder %s940_s14, 2 }
  0x11   : > { %s1018_s23 = scalar_select %p40_p7, %s928_s11, %s42_s18  }
  0x12   : > { %p1020_p11 = por %p113_p10, %p55_p3  ;;  %p727_p13 = scmp.lt.s32.totalorder %s940_s14, 2 }
  0x13   : > { %s1027_s25 = sand.u32 1, %s928_s11   ;;  %s706_s27 = sshll.u32 %s936_s13, 4 }
  0x14   : > { %s694_s26 = sshll.u32 %s1027_s25, 4  ;;  %s143_s30 = scalar_lea.hbm %s1279_s0, %s706_s27 }
  0x15   : > { %s137_s3 = scalar_lea.vmem [#allocation2], %s694_s26  ;;  %s144_s5 = sshll.u32 %s143_s30, 4  ;;  %s145_s5 = int_to_ptr.hbm [resolvable:$true] %s144_s5 }
  0x16   : > { %s146_s4 = sshll.u32 %s137_s3, 4  ;;  %p1036_p0 = pnand %p727_p13, %p1003_p4  ;;  %s147_s4 = int_to_ptr.vmem [resolvable:$true] %s146_s4 }
  0x17   : > { %p700_p1 = scmp.ge.s32.totalorder %s940_s14, 1  ;;  %s134_s7 = scalar_lea.sflag [#allocation3], %s1027_s25 }
  0x18   : > { %s942_s8 = smov 128   ;;  %s943_s15 = smov 8  }
  0x19   : > { %719 = dma.hbm_to_vmem [thread:$0]  (!%p1036_p0), %s145_s5, 256, %s147_s4, %s134_s7, %s942_s8, %s942_s8, %s943_s15  }
  0x1a   : > { %p177_p2 = scmp.lt.s32.totalorder %s940_s14, 3  ;;  %s166_s20 = scalar_lea.hbm %s1280_s1, %s706_s27 }
  0x1b   : > { %s167_s28 = sshll.u32 %s166_s20, 4  ;;  %s160_s19 = scalar_lea.vmem [#allocation5], %s694_s26  ;;  %s168_s28 = int_to_ptr.hbm [resolvable:$true] %s167_s28 }
  0x1c   : > { %p178_p3 = pnand %p700_p1, %p177_p2  ;;  %s169_s29 = sshll.u32 %s160_s19, 4  ;;  %s170_s29 = int_to_ptr.vmem [resolvable:$true] %s169_s29 }
  0x1d   : > { %s157_s30 = scalar_lea.sflag [#allocation6], %s1027_s25  ;;  %s1052_s3 = sand.u32 (!%p178_p3), 1, %s924_s10  }
  0x1e   : > { %722 = dma.hbm_to_vmem [thread:$0]  (!%p1036_p0), %s168_s28, 256, %s170_s29, %s157_s30, %s942_s8, %s942_s8, %s943_s15  }
  0x1f   : > { %181 = sbr.rel (%p178_p3) target bundleno = 150 (0x96), region = 28  ;;  %s701_s4 = sshll.u32 (!%p178_p3), %s1052_s3, 4 }
  0x20   : > { %s184_s5 = scalar_lea.sflag (!%p178_p3), [#allocation3], %s1052_s3  ;;  %s187_s7 = scalar_lea.vmem (!%p178_p3), [#allocation2], %s701_s4 }
  0x24   : > { %907 = dma.done.wait (%p1009_p8), %s184_s5, 256  }
  0x25   : > { %909 = vsyncadd (%p1009_p8), %s184_s5, 4294967040  ;;  %s194_s25 = scalar_lea.sflag [#allocation6], %s1052_s3  ;;  %s197_s26 = scalar_lea.vmem [#allocation5], %s701_s4 }
  0x26   : > { %911 = dma.done.wait (%p1009_p8), %s194_s25, 256  }
  0x27   : > { %913 = vsyncadd (%p1009_p8), %s194_s25, 4294967040  ;;  %v1065_v0 = vld [vmem:[%s187_s7] sm:$0xff]  ;;  %v1067_v1 = vld [vmem:[%s187_s7 + $0x8] sm:$0xff]  ;;  %s708_s21 = smul.u32 24, %s1052_s3  ;;  %s569_s20 = scalar_lea.sflag [#allocation4], %s1052_s3 }
  0x28   : > { %v239_v2 = vand.u32 2147483647, %v1065_v0  ;;  %v240_v3 = vand.u32 2147483647, %v1067_v1  ;;  %v1076_v11 = vld [vmem:[%s197_s26] sm:$0xff]  ;;  %v1078_v12 = vld [vmem:[%s197_s26 + $0x8] sm:$0xff] }
  0x29   : > { %v247_v16 = vmax.f32 %v1065_v0, 0.0  ;;  %v248_v17 = vmax.f32 %v1067_v1, 0.0  ;;  %v249_v18 = vmul.f32 %v1076_v11, %v1065_v0  ;;  %v250_v19 = vmul.f32 %v1078_v12, %v1067_v1  ;;  %s1188_s27 = scalar_lea.vmem [#allocation7], %s708_s21  ;;  %s709_s6 = smul.u32 24, %s932_s12 }
  0x2a   : > { %v241_v4 = vsub.f32 0.0, %v239_v2  ;;  %v242_v5 = vsub.f32 0.0, %v240_v3  ;;  %vm305_vm10 = vcmp.ge.f32.partialorder %v1065_v0, 0.0  ;;  %vm306_vm11 = vcmp.ge.f32.partialorder %v1067_v1, 0.0  ;;  %s581_s18 = sshll.u32 %s1188_s27, 4  ;;  %s874_s4 = scalar_lea.hbm %s1281_s2, 48  ;;  %s582_s18 = int_to_ptr.vmem [resolvable:$true] %s581_s18 }
  0x2b   : > { %v251_v26 = vsub.f32 %v247_v16, %v249_v18  ;;  %v252_v27 = vsub.f32 %v248_v17, %v250_v19  ;;  %v944_v1 = vmov 0.0   ;;  %s580_s16 = scalar_lea.hbm %s1281_s2, %s709_s6 }
  0x2c   : > { %v243_v6 = vmul.f32 1.442695, %v241_v4  ;;  %v245_v7 = vmul.f32 1.442695, %v242_v5  ;;  %s583_s12 = sshll.u32 %s580_s16, 4  ;;  %s584_s12 = int_to_ptr.hbm [resolvable:$true] %s583_s12 }
  0x2d   : > { %s868_s28 = sshra.s32 %s584_s12, 4  ;;  %s869_s28 = int_to_ptr.hbm [resolvable:$true] %s868_s28 }
  0x2e   : > { %782 = vpow2.f32 %v243_v6  ;;  %s870_s19 = scalar_lea.hbm %s869_s28, 24  ;;  %p875_p7 = scmp.lt.s32.totalorder %s869_s28, %s1281_s2 }
  0x2f   : > { %784 = vpow2.f32 %v245_v7  ;;  %p871_p4 = scmp.ne.s32.totalorder %s869_s28, %s870_s19  ;;  %p876_p8 = scmp.lt.s32.totalorder %s874_s4, %s870_s19 }
  0x31   : > { %p872_p5 = pnand %p871_p4, %p1013_p9  ;;  %p877_p10 = por %p876_p8, %p875_p7 }
  0x33   : > { %p873_p6 = pneg %p872_p5 }
  0x34   : > { %v1071_v8 = vpop.eup %782 }
  0x35   : > { %v1073_v9 = vpop.eup %784  ;;  %v253_v10 = vadd.f32 1.0, %v1071_v8  ;;  %v256_v14 = vmul.f32 -0.5, %v1071_v8  ;;  %v259_v21 = vand.u32 2147483647, %v1071_v8  ;;  %p878_p13 = pnand %p877_p10, %p873_p6 }
  0x36   : > { %v262_v13 = vadd.f32 1.0, %v1073_v9  ;;  %v265_v15 = vmul.f32 -0.5, %v1073_v9  ;;  %v268_v23 = vand.u32 2147483647, %v1073_v9 }
  0x37   : > { %786 = vrcp.f32 %v253_v10  ;;  %v257_v20 = vadd.f32 1.0, %v256_v14  ;;  %vm280_vm0 = vweird.f32 %v253_v10  ;;  %v284_v25 = vand.u32 2147483647, %v253_v10 }
  0x38   : > { %788 = vrcp.f32 %v262_v13  ;;  %v266_v22 = vadd.f32 1.0, %v265_v15  ;;  %v286_v30 = vand.u32 2147483648, %v253_v10  ;;  %vm295_vm1 = vweird.f32 %v262_v13 }
  0x39   : > { %790 = vlog2.f32 %v253_v10  ;;  %v258_v31 = vmul.f32 %v1071_v8, %v257_v20  ;;  %v301_v34 = vand.u32 2147483648, %v262_v13  ;;  %vm1092_vm2 = vcmp.lt.f32.partialorder %v259_v21, 0.0004427343 }
  0x3a   : > { %792 = vlog2.f32 %v262_v13  ;;  %v267_v36 = vmul.f32 %v1073_v9, %v266_v22  ;;  %vm1097_vm4 = vcmp.lt.f32.partialorder %v268_v23, 0.0004427343  ;;  %v299_v42 = vand.u32 2147483647, %v262_v13 }
  0x3b   : > { %v287_v46 = vor.u32 1.1754944e-38, %v286_v30  ;;  %vm285_vm7 = vcmp.eq.f32.partialorder %v284_v25, 8.507059e+37  ;;  %v302_v51 = vor.u32 1.1754944e-38, %v301_v34 }
  0x3c   : > { %vm300_vm9 = vcmp.eq.f32.partialorder %v299_v42, 8.507059e+37 }
  0x3d   : > { %v787_v24 = vpop.eup %786 }
  0x3e   : > { %v789_v28 = vpop.eup %788  ;;  %v276_v29 = vmul.f32 %v787_v24, %v253_v10  ;;  %vm281_vm3 = vweird.f32 %v787_v24 }
  0x3f   : > { %v791_v32 = vpop.eup %790  ;;  %v291_v33 = vmul.f32 %v789_v28, %v262_v13  ;;  %vm296_vm5 = vweird.f32 %v789_v28  ;;  %vm282_vm6 = vmor %vm280_vm0, %vm281_vm3 }
  0x40   : > { %v793_v37 = vpop.eup %792  ;;  %v277_v38 = vsub.f32 1.0, %v276_v29  ;;  %v255_v39 = vmul.f32 0.6931472, %v791_v32  ;;  %vm297_vm8 = vmor %vm295_vm1, %vm296_vm5 }
  0x41   : > { %v292_v41 = vsub.f32 1.0, %v291_v33  ;;  %v264_v43 = vmul.f32 0.6931472, %v793_v37 }
  0x42   : > { %v278_v44 = vmul.f32 %v787_v24, %v277_v38  ;;  %v261_v45 = vsel %vm1092_vm2, %v258_v31, %v255_v39 }
  0x43   : > { %v293_v47 = vmul.f32 %v789_v28, %v292_v41  ;;  %v270_v48 = vsel %vm1097_vm4, %v267_v36, %v264_v43  ;;  %v1106_v49 = vadd.f32 %v261_v45, %v251_v26 }
  0x44   : > { %v279_v50 = vadd.f32 %v787_v24, %v278_v44  ;;  %v1109_v52 = vadd.f32 %v270_v48, %v252_v27 }
  0x45   : > { %v294_v53 = vadd.f32 %v789_v28, %v293_v47 }
  0x46   : > { %v283_v54 = vsel %vm282_vm6, %v787_v24, %v279_v50  ;;  %v317_v55 = vadd.f32 %v1109_v52, %v1106_v49  ;;  %vm533_vm6 = vcmask 1040384  }
  0x47   : > { %v288_v56 = vsel %vm285_vm7, %v287_v46, %v283_v54  ;;  %v298_v57 = vsel %vm297_vm8, %v789_v28, %v294_v53  ;;  %vm535_vm8 = vcmask 1041408  }
  0x48   : > { %v303_v58 = vsel %vm300_vm9, %v302_v51, %v298_v57  ;;  %v307_v59 = vmul.f32 %v1071_v8, %v288_v56  ;;  %v318_v60 = vrot.slane %v317_v55, 4 }
  0x49   : > { %v308_v61 = vmul.f32 %v1073_v9, %v303_v58 }
  0x4a   : > { %v309_v62 = vsel %vm305_vm10, %v288_v56, %v307_v59  ;;  %v319_v63 = vadd.f32 %v318_v60, %v317_v55  ;;  %vm537_vm10 = vcmask 1042432  }
  0x4b   : > { %v310_v2 = vsel %vm306_vm11, %v303_v58, %v308_v61  ;;  %v311_v3 = vsub.f32 %v309_v62, %v1076_v11  ;;  %vm539_vm11 = vcmask 1043456  }
  0x4c   : > { %v312_v4 = vsub.f32 %v310_v2, %v1078_v12  ;;  %v320_v5 = vrot.slane %v319_v63, 2 }
  0x4d   : > { %v1119_v6 = vand.u32 2147483647, %v311_v3 }
  0x4e   : > { %v1121_v7 = vand.u32 2147483647, %v312_v4  ;;  %v1126_v0 = vadd.f32 %v320_v5, %v319_v63 }
  0x4f   : > { %vm324_vm12 = vcmp.ge.f32.partialorder %v1119_v6, 0.1  ;;  %vm346_vm13 = vcmp.ge.f32.partialorder %v1119_v6, 0.2  ;;  %vm368_vm14 = vcmp.ge.f32.partialorder %v1119_v6, 0.3 }
  0x50   : > { %vm325_vm15 = vcmp.ge.f32.partialorder %v1121_v7, 0.1  ;;  %v326_v8 = vsel %vm324_vm12, 1.0, %v944_v1  ;;  %vm347_vm0 = vcmp.ge.f32.partialorder %v1121_v7, 0.2  ;;  %v348_v9 = vsel %vm346_vm13, 1.0, %v944_v1 }
  0x51   : > { %v327_v10 = vsel %vm325_vm15, 1.0, %v944_v1  ;;  %v349_v11 = vsel %vm347_vm0, 1.0, %v944_v1  ;;  %vm369_vm1 = vcmp.ge.f32.partialorder %v1121_v7, 0.3  ;;  %v370_v12 = vsel %vm368_vm14, 1.0, %v944_v1 }
  0x52   : > { %v328_v13 = vadd.f32 %v327_v10, %v326_v8  ;;  %v350_v14 = vadd.f32 %v349_v11, %v348_v9  ;;  %v371_v15 = vsel %vm369_vm1, 1.0, %v944_v1  ;;  %vm390_vm2 = vcmp.ge.f32.partialorder %v1119_v6, 0.4 }
  0x53   : > { %v372_v16 = vadd.f32 %v371_v15, %v370_v12  ;;  %vm391_vm3 = vcmp.ge.f32.partialorder %v1121_v7, 0.4  ;;  %v392_v17 = vsel %vm390_vm2, 1.0, %v944_v1  ;;  %vm412_vm4 = vcmp.ge.f32.partialorder %v1119_v6, 0.5 }
  0x54   : > { %v329_v18 = vrot.slane %v328_v13, 4  ;;  %v351_v19 = vrot.slane %v350_v14, 4  ;;  %v393_v20 = vsel %vm391_vm3, 1.0, %v944_v1  ;;  %vm413_vm5 = vcmp.ge.f32.partialorder %v1121_v7, 0.5 }
  0x55   : > { %v373_v21 = vrot.slane %v372_v16, 4  ;;  %v394_v22 = vadd.f32 %v393_v20, %v392_v17  ;;  %v414_v23 = vsel %vm412_vm4, 1.0, %v944_v1  ;;  %v415_v24 = vsel %vm413_vm5, 1.0, %v944_v1 }
  0x56   : > { %v330_v25 = vadd.f32 %v329_v18, %v328_v13  ;;  %v352_v26 = vadd.f32 %v351_v19, %v350_v14  ;;  %v416_v27 = vadd.f32 %v415_v24, %v414_v23  ;;  %vm434_vm7 = vcmp.ge.f32.partialorder %v1119_v6, 0.6 }
  0x57   : > { %v374_v28 = vadd.f32 %v373_v21, %v372_v16  ;;  %v395_v29 = vrot.slane %v394_v22, 4  ;;  %vm435_vm9 = vcmp.ge.f32.partialorder %v1121_v7, 0.6  ;;  %v436_v30 = vsel %vm434_vm7, 1.0, %v944_v1 }
  0x58   : > { %v331_v31 = vrot.slane %v330_v25, 2  ;;  %v353_v32 = vrot.slane %v352_v26, 2  ;;  %v417_v33 = vrot.slane %v416_v27, 4  ;;  %v437_v34 = vsel %vm435_vm9, 1.0, %v944_v1 }
  0x59   : > { %v375_v35 = vrot.slane %v374_v28, 2  ;;  %v396_v36 = vadd.f32 %v395_v29, %v394_v22  ;;  %v438_v37 = vadd.f32 %v437_v34, %v436_v30  ;;  %vm456_vm12 = vcmp.ge.f32.partialorder %v1119_v6, 0.7 }
  0x5a   : > { %vm541_vm13 = vcmask 1044480   ;;  %v332_v38 = vadd.f32 %v331_v31, %v330_v25  ;;  %v354_v39 = vadd.f32 %v353_v32, %v352_v26  ;;  %v418_v40 = vadd.f32 %v417_v33, %v416_v27 }
  0x5b   : > { %vm457_vm14 = vcmp.ge.f32.partialorder %v1121_v7, 0.7  ;;  %v376_v41 = vadd.f32 %v375_v35, %v374_v28  ;;  %v397_v42 = vrot.slane %v396_v36, 2  ;;  %v439_v43 = vrot.slane %v438_v37, 4 }
  0x5c   : > { %v458_v44 = vsel %vm456_vm12, 1.0, %v944_v1  ;;  %v333_v45 = vrot.slane %v332_v38, 1  ;;  %v355_v46 = vrot.slane %v354_v39, 1  ;;  %v419_v47 = vrot.slane %v418_v40, 2 }
  0x5d   : > { %v459_v48 = vsel %vm457_vm14, 1.0, %v944_v1  ;;  %vm543_vm15 = vcmask 1045504   ;;  %v377_v50 = vrot.slane %v376_v41, 1  ;;  %v398_v51 = vadd.f32 %v397_v42, %v396_v36 }
  0x5e   : > { %v440_v53 = vadd.f32 %v439_v43, %v438_v37  ;;  %v460_v54 = vadd.f32 %v459_v48, %v458_v44  ;;  %v334_v55 = vadd.f32 %v333_v45, %v332_v38  ;;  %v356_v56 = vadd.f32 %v355_v46, %v354_v39 }
  0x5f   : > { %v420_v57 = vadd.f32 %v419_v47, %v418_v40  ;;  %v1154_v58 = vmul.f32 10.0, %v1119_v6  ;;  %v378_v59 = vadd.f32 %v377_v50, %v376_v41  ;;  %v399_v60 = vrot.slane %v398_v51, 1 }
  0x60   : > { %v441_v61 = vrot.slane %v440_v53, 2  ;;  %v461_v62 = vrot.slane %v460_v54, 4  ;;  %v534_v2 = vsel %vm533_vm6, 16.0, %v334_v55  ;;  %vm545_vm0 = vcmask 1046528  }
  0x61   : > { %v421_v63 = vrot.slane %v420_v57, 1  ;;  %v1158_v3 = vmul.f32 10.0, %v1121_v7  ;;  %v400_v4 = vadd.f32 %v399_v60, %v398_v51  ;;  %v536_v9 = vsel %vm535_vm8, %v534_v2, %v356_v56 }
  0x62   : > { %v442_v5 = vadd.f32 %v441_v61, %v440_v53  ;;  %v462_v8 = vadd.f32 %v461_v62, %v460_v54  ;;  %v538_v11 = vsel %vm537_vm10, %v536_v9, %v378_v59  ;;  %v322_v12 = vrot.slane %v1126_v0, 1 }
  0x63   : > { %v422_v10 = vadd.f32 %v421_v63, %v420_v57  ;;  %vm335_vm1 = vcmp.ge.f32.partialorder %v1154_v58, 1.0  ;;  %v540_v15 = vsel %vm539_vm11, %v538_v11, %v400_v4  ;;  %vm336_vm2 = vcmp.ge.f32.partialorder %v1158_v3, 1.0 }
  0x64   : > { %v443_v13 = vrot.slane %v442_v5, 1  ;;  %v463_v14 = vrot.slane %v462_v8, 2  ;;  %v337_v17 = vsel %vm335_vm1, %v1106_v49, 0.0  ;;  %v338_v18 = vsel %vm336_vm2, %v1109_v52, 0.0 }
  0x65   : > { %v542_v16 = vsel %vm541_vm13, %v540_v15, %v422_v10  ;;  %vm357_vm3 = vcmp.ge.f32.partialorder %v1154_v58, 2.0  ;;  %v339_v21 = vadd.f32 %v338_v18, %v337_v17  ;;  %vm358_vm4 = vcmp.ge.f32.partialorder %v1158_v3, 2.0 }
  0x66   : > { %v444_v19 = vadd.f32 %v443_v13, %v442_v5  ;;  %v464_v20 = vadd.f32 %v463_v14, %v462_v8  ;;  %v359_v22 = vsel %vm357_vm3, %v1106_v49, 0.0  ;;  %v360_v23 = vsel %vm358_vm4, %v1109_v52, 0.0 }
  0x67   : > { %vm379_vm5 = vcmp.ge.f32.partialorder %v1154_v58, 3.0  ;;  %vm380_vm7 = vcmp.ge.f32.partialorder %v1158_v3, 3.0  ;;  %v340_v26 = vrot.slane %v339_v21, 4  ;;  %v361_v27 = vadd.f32 %v360_v23, %v359_v22 }
  0x68   : > { %v465_v24 = vrot.slane %v464_v20, 1  ;;  %v544_v25 = vsel %vm543_vm15, %v542_v16, %v444_v19  ;;  %v381_v28 = vsel %vm379_vm5, %v1106_v49, 0.0  ;;  %v382_v29 = vsel %vm380_vm7, %v1109_v52, 0.0 }
  0x69   : > { %vm401_vm9 = vcmp.ge.f32.partialorder %v1154_v58, 4.0  ;;  %vm402_vm12 = vcmp.ge.f32.partialorder %v1158_v3, 4.0  ;;  %v341_v31 = vadd.f32 %v340_v26, %v339_v21  ;;  %v362_v32 = vrot.slane %v361_v27, 4 }
  0x6a   : > { %v466_v30 = vadd.f32 %v465_v24, %v464_v20  ;;  %v383_v33 = vadd.f32 %v382_v29, %v381_v28  ;;  %v403_v34 = vsel %vm401_vm9, %v1106_v49, 0.0  ;;  %v404_v35 = vsel %vm402_vm12, %v1109_v52, 0.0 }
  0x6b   : > { %vm478_vm14 = vcmp.ge.f32.partialorder %v1119_v6, 0.8  ;;  %vm479_vm1 = vcmp.ge.f32.partialorder %v1121_v7, 0.8  ;;  %v342_v37 = vrot.slane %v341_v31, 2  ;;  %v363_v38 = vadd.f32 %v362_v32, %v361_v27 }
  0x6c   : > { %v546_v36 = vsel %vm545_vm0, %v544_v25, %v466_v30  ;;  %v384_v39 = vrot.slane %v383_v33, 4  ;;  %v405_v40 = vadd.f32 %v404_v35, %v403_v34  ;;  %v480_v41 = vsel %vm478_vm14, 1.0, %v944_v1 }
  0x6d   : > { %v481_v42 = vsel %vm479_vm1, 1.0, %v944_v1  ;;  %v343_v43 = vadd.f32 %v342_v37, %v341_v31  ;;  %v364_v44 = vrot.slane %v363_v38, 2  ;;  %565 = vst [vmem:[%s1188_s27] sm:$0xff] %v546_v36  ;;  %vm500_vm2 = vcmp.ge.f32.partialorder %v1119_v6, 0.9 }
  0x6e   : > { %v385_v45 = vadd.f32 %v384_v39, %v383_v33  ;;  %v482_v46 = vadd.f32 %v481_v42, %v480_v41  ;;  %v406_v47 = vrot.slane %v405_v40, 4  ;;  %vm501_vm3 = vcmp.ge.f32.partialorder %v1121_v7, 0.9 }
  0x6f   : > { %vm522_vm4 = vcmp.ge.f32.partialorder %v1119_v6, 1.0  ;;  %v344_v48 = vrot.slane %v343_v43, 1  ;;  %v365_v50 = vadd.f32 %v364_v44, %v363_v38  ;;  %v502_v55 = vsel %vm500_vm2, 1.0, %v944_v1 }
  0x70   : > { %v386_v51 = vrot.slane %v385_v45, 2  ;;  %v483_v53 = vrot.slane %v482_v46, 4  ;;  %v407_v54 = vadd.f32 %v406_v47, %v405_v40  ;;  %v503_v56 = vsel %vm501_vm3, 1.0, %v944_v1 }
  0x71   : > { %vm523_vm5 = vcmp.ge.f32.partialorder %v1121_v7, 1.0  ;;  %v1198_v57 = vadd.f32 %v322_v12, %v1126_v0  ;;  %v366_v59 = vrot.slane %v365_v50, 1  ;;  %v504_v63 = vadd.f32 %v503_v56, %v502_v55 }
  0x72   : > { %v387_v60 = vadd.f32 %v386_v51, %v385_v45  ;;  %v484_v61 = vadd.f32 %v483_v53, %v482_v46  ;;  %v408_v62 = vrot.slane %v407_v54, 2  ;;  %v524_v6 = vsel %vm522_vm4, 1.0, %v944_v1 }
  0x73   : > { %v525_v2 = vsel %vm523_vm5, 1.0, %v944_v1  ;;  %v1202_v4 = vadd.f32 %v344_v48, %v343_v43  ;;  %v505_v11 = vrot.slane %v504_v63, 4  ;;  %vm423_vm7 = vcmp.ge.f32.partialorder %v1154_v58, 5.0 }
  0x74   : > { %v388_v5 = vrot.slane %v387_v60, 1  ;;  %v485_v8 = vrot.slane %v484_v61, 2  ;;  %v526_v9 = vadd.f32 %v525_v2, %v524_v6  ;;  %v409_v10 = vadd.f32 %v408_v62, %v407_v54 }
  0x75   : > { %vm424_vm9 = vcmp.ge.f32.partialorder %v1158_v3, 5.0  ;;  %v367_v7 = vadd.f32 %v366_v59, %v365_v50  ;;  %v425_v13 = vsel %vm423_vm7, %v1106_v49, 0.0  ;;  %v506_v15 = vadd.f32 %v505_v11, %v504_v63 }
  0x76   : > { %v486_v0 = vadd.f32 %v485_v8, %v484_v61  ;;  %v527_v12 = vrot.slane %v526_v9, 4  ;;  %v389_v14 = vadd.f32 %v388_v5, %v387_v60  ;;  %v426_v1 = vsel %vm424_vm9, %v1109_v52, 0.0 }
  0x77   : > { %vm445_vm12 = vcmp.ge.f32.partialorder %v1154_v58, 6.0  ;;  %v427_v18 = vadd.f32 %v426_v1, %v425_v13  ;;  %vm446_vm14 = vcmp.ge.f32.partialorder %v1158_v3, 6.0  ;;  %v410_v19 = vrot.slane %v409_v10, 1 }
  0x78   : > { %v487_v16 = vrot.slane %v486_v0, 1  ;;  %v528_v17 = vadd.f32 %v527_v12, %v526_v9  ;;  %v507_v20 = vrot.slane %v506_v15, 2  ;;  %v447_v21 = vsel %vm445_vm12, %v1106_v49, 0.0 }
  0x79   : > { %v448_v22 = vsel %vm446_vm14, %v1109_v52, 0.0  ;;  %v428_v25 = vrot.slane %v427_v18, 4  ;;  %vm467_vm1 = vcmp.ge.f32.partialorder %v1154_v58, 7.0  ;;  %vm468_vm2 = vcmp.ge.f32.partialorder %v1158_v3, 7.0 }
  0x7a   : > { %v488_v23 = vadd.f32 %v487_v16, %v486_v0  ;;  %v529_v24 = vrot.slane %v528_v17, 2  ;;  %v449_v26 = vadd.f32 %v448_v22, %v447_v21  ;;  %v508_v27 = vadd.f32 %v507_v20, %v506_v15 }
  0x7b   : > { %vm489_vm3 = vcmp.ge.f32.partialorder %v1154_v58, 8.0  ;;  %v429_v29 = vadd.f32 %v428_v25, %v427_v18  ;;  %v469_v31 = vsel %vm467_vm1, %v1106_v49, 0.0  ;;  %v470_v33 = vsel %vm468_vm2, %v1109_v52, 0.0 }
  0x7c   : > { %v530_v28 = vadd.f32 %v529_v24, %v528_v17  ;;  %v450_v30 = vrot.slane %v449_v26, 4  ;;  %v509_v32 = vrot.slane %v508_v27, 1  ;;  %vm490_vm4 = vcmp.ge.f32.partialorder %v1158_v3, 8.0 }
  0x7d   : > { %v491_v34 = vsel %vm489_vm3, %v1106_v49, 0.0  ;;  %v430_v36 = vrot.slane %v429_v29, 2  ;;  %v471_v38 = vadd.f32 %v470_v33, %v469_v31  ;;  %v492_v40 = vsel %vm490_vm4, %v1109_v52, 0.0 }
  0x7e   : > { %v531_v35 = vrot.slane %v530_v28, 1  ;;  %v451_v37 = vadd.f32 %v450_v30, %v449_v26  ;;  %v510_v39 = vadd.f32 %v509_v32, %v508_v27  ;;  %vm511_vm5 = vcmp.ge.f32.partialorder %v1154_v58, 9.0 }
  0x7f   : > { %vm512_vm7 = vcmp.ge.f32.partialorder %v1158_v3, 9.0  ;;  %v431_v42 = vadd.f32 %v430_v36, %v429_v29  ;;  %v472_v44 = vrot.slane %v471_v38, 4  ;;  %v493_v46 = vadd.f32 %v492_v40, %v491_v34 }
  0x80   : > { %v532_v41 = vadd.f32 %v531_v35, %v530_v28  ;;  %v452_v43 = vrot.slane %v451_v37, 2  ;;  %v547_v45 = vsel %vm533_vm6, %v488_v23, %v510_v39  ;;  %v513_v47 = vsel %vm511_vm5, %v1106_v49, 0.0 }
  0x81   : > { %v514_v48 = vsel %vm512_vm7, %v1109_v52, 0.0  ;;  %v432_v51 = vrot.slane %v431_v42, 1  ;;  %v473_v54 = vadd.f32 %v472_v44, %v471_v38  ;;  %v411_v55 = vadd.f32 %v410_v19, %v409_v10 }
  0x82   : > { %v548_v50 = vsel %vm535_vm8, %v547_v45, %v532_v41  ;;  %v453_v53 = vadd.f32 %v452_v43, %v451_v37  ;;  %v494_v3 = vrot.slane %v493_v46, 4  ;;  %v515_v56 = vadd.f32 %v514_v48, %v513_v47 }
  0x83   : > { %v549_v58 = vsel %vm537_vm10, %v548_v50, %v1198_v57  ;;  %v433_v60 = vadd.f32 %v432_v51, %v431_v42  ;;  %v474_v49 = vrot.slane %v473_v54, 2 }
  0x84   : > { %v550_v59 = vsel %vm539_vm11, %v549_v58, %v1202_v4  ;;  %v454_v61 = vrot.slane %v453_v53, 1  ;;  %v495_v62 = vadd.f32 %v494_v3, %v493_v46  ;;  %v516_v63 = vrot.slane %v515_v56, 4 }
  0x85   : > { %v551_v52 = vsel %vm541_vm13, %v550_v59, %v367_v7  ;;  %v475_v5 = vadd.f32 %v474_v49, %v473_v54 }
  0x86   : > { %v552_v6 = vsel %vm543_vm15, %v551_v52, %v389_v14  ;;  %v455_v2 = vadd.f32 %v454_v61, %v453_v53  ;;  %v496_v8 = vrot.slane %v495_v62, 2  ;;  %v517_v9 = vadd.f32 %v516_v63, %v515_v56 }
  0x87   : > { %v553_v57 = vsel %vm545_vm0, %v552_v6, %v411_v55  ;;  %v476_v10 = vrot.slane %v475_v5, 1 }
  0x88   : > { %v554_v4 = vsel %vm533_vm6, %v433_v60, %v455_v2  ;;  %v497_v11 = vadd.f32 %v496_v8, %v495_v62  ;;  %v518_v0 = vrot.slane %v517_v9, 2  ;;  %566 = vst [vmem:[%s1188_s27 + $0x8] sm:$0xff] %v553_v57 }
  0x89   : > { %v477_v7 = vadd.f32 %v476_v10, %v475_v5 }
  0x8a   : > { %v498_v12 = vrot.slane %v497_v11, 1  ;;  %v519_v13 = vadd.f32 %v518_v0, %v517_v9 }
  0x8b   : > { %v555_v14 = vsel %vm535_vm8, %v554_v4, %v477_v7 }
  0x8c   : > { %v499_v15 = vadd.f32 %v498_v12, %v497_v11  ;;  %v520_v1 = vrot.slane %v519_v13, 1 }
  0x8e   : > { %v521_v16 = vadd.f32 %v520_v1, %v519_v13  ;;  %v556_v17 = vsel %vm537_vm10, %v555_v14, %v499_v15 }
  0x90   : > { %v557_v18 = vsel %vm539_vm11, %v556_v17, %v521_v16 }
  0x91   : > { %v558_v19 = vsel %vm541_vm13, %v557_v18, 0.0 }
  0x92   : > { %567 = vst [vmem:[%s1188_s27 + $0x10] sm:$0xff] %v558_v19 }
  0x93   : > { %881 = shalt.err (!%p878_p13)
}
  0x94   : > { %s945_s3 = smov 128   ;;  %s946_s25 = smov 8  }
  0x95   : > { %714 = dma.vmem_to_hbm [thread:$0]  (%p1013_p9), %s582_s18, 384, %s584_s12, %s569_s20, %s945_s3, %s945_s3, %s946_s25  }
  0x96 PF: > { %s598_s26 = sand.u32 1, %s920_s9   ;;  %p724_p0 = pnand %p693_p12, %p1020_p11 }
  0x97   : > { %s599_s21 = scalar_lea.sflag [#allocation4], %s598_s26 }
  0x98   : > { %p725_p1 = pneg %p724_p0 }
  0x9a   : > { %915 = dma.done.wait (%p725_p1), %s599_s21, 384  }
  0x9b   : > { %917 = vsyncadd (%p725_p1), %s599_s21, 4294966912  ;;  %s21_s14 = sadd.s32 1, %s940_s14   ;;  %s1291_s9 = smov %s924_s10 }
  0x9c   : > { %p18_p2 = scmp.ge.s32.totalorder %s21_s14, 4   ;;  %s1292_s10 = smov %s928_s11 }
  0x9d   : > { %s1293_s11 = smov %s1018_s23  ;;  %s1294_s12 = smov %s936_s13 }
  0x9e   : > { %s1295_s13 = smov %s1297_s17  ;;  %20 = sbr.rel (!%p18_p2) target bundleno = 8 (0x8), region = 90 }
  0xa3   :  { %605 = vsyncpa [#allocation3], 1 }
  0xa4   :  { %607 = vsyncpa [#allocation3 + $0x1], 1 }
  0xa5   :  { %608 = vsyncpa [#allocation6], 1 }
  0xa6   :  { %610 = vsyncpa [#allocation6 + $0x1], 1 }
  0xa7   :  { %611 = vsyncpa [#allocation4], 1 }
  0xa8   :  { %613 = vsyncpa [#allocation4 + $0x1], 1 }

</bundles_post_ra>
